<compile_context>
chip_gen: v7x
topology: tpu7x:2x2x1
jax: 0.10.0
libtpu: 0.0.40
codegen_flags: <defaults>
</compile_context>

<pallas_src>
import jax
import jax.numpy as jnp
from jax.experimental import pallas as pl
from jax.experimental.pallas import tpu as pltpu  # noqa: F401  (for CompilerParams once a grid axis is added)


# ----------------------------------------------------------------------------
# Fused attention kernel: entire (batch*heads) problem in a single step.
# ----------------------------------------------------------------------------
def _make_mha2_kernel(scale):
    def kernel(q_ref, kv_ref, o_ref):
        # q_ref : (B*H, nq,  sc)    kv_ref : (B*H, nkv, sc)
        q = q_ref[...].astype(jnp.float32) * scale
        kv = kv_ref[...].astype(jnp.float32)

        # scores (B*H, nq, nkv): batched contraction over the head dim (MXU)
        s = jnp.einsum("bqd,bkd->bqk", q, kv,
                       preferred_element_type=jnp.float32)

        # numerically-stable softmax; normalization deferred past attn @ V
        m = jnp.max(s, axis=-1, keepdims=True)
        p = jnp.exp(s - m)
        l = jnp.sum(p, axis=-1, keepdims=True)

        out = jnp.einsum("bqk,bkd->bqd", p, kv,
                         preferred_element_type=jnp.float32)
        out = out * pl.reciprocal(l, approx=True)   # EUP vrcp, frees VALU
        o_ref[...] = out.astype(o_ref.dtype)
    return kernel


def multi_headed_attention2(q, kv, b=None, t=None, c=None,
                            *, n_head=1, d_model=35):
    """Pallas forward of MultiHeadedAttention2.

    `b`, `t`, `c` mirror the torch forward signature and are ignored (the
    reference re-derives them from the tensors)."""
    del b, t, c
    B, nq, C = q.shape
    Bk, nkv, Ck = kv.shape
    assert B == Bk and C == Ck and C % n_head == 0
    sc = C // n_head
    scale = float(d_model) ** (-0.5)

    # Head-major (B*H, n, sc) layout built by XLA outside the kernel
    # (identity for n_head == 1); keeps head handling off the vector lanes.
    if n_head == 1:
        qh, kvh = q, kv
    else:
        qh = q.reshape(B, nq, n_head, sc).transpose(0, 2, 1, 3) \
              .reshape(B * n_head, nq, sc)
        kvh = kv.reshape(B, nkv, n_head, sc).transpose(0, 2, 1, 3) \
                .reshape(B * n_head, nkv, sc)

    out = pl.pallas_call(
        _make_mha2_kernel(scale),
        out_shape=jax.ShapeDtypeStruct((B * n_head, nq, sc), q.dtype),
    )(qh, kvh)
    # TODO(synk): for long sequences add a kv-tile grid axis with flash-style
    # online softmax (tile threshold set by v7x's 64 MiB VMEM), a
    # CORE_PARALLEL batch/head axis so both v7x TensorCores are engaged, and
    # bf16 matmul operands + block-diagonal head packing for MXU utilization;
    # at nq=nkv=64, C=32 the single fused step is fastest.

    if n_head == 1:
        return out
    return out.reshape(B, n_head, nq, sc).transpose(0, 2, 1, 3) \
              .reshape(B, nq, C)


# ----------------------------------------------------------------------------
# Pure-JAX reference (mirrors the PyTorch forward) for correctness checking.
# ----------------------------------------------------------------------------
def _reference(q, kv, n_head, d_model):
    B, nkv, C = kv.shape
    nq = q.shape[1]
    sc = C // n_head
    scale = float(d_model) ** (-0.5)
    qh = q.reshape(B, nq, n_head, sc).transpose(0, 2, 1, 3) * scale
    kvh = kv.reshape(B, nkv, n_head, sc).transpose(0, 2, 1, 3)
    attn = jax.nn.softmax(jnp.einsum("bhqd,bhkd->bhqk", qh, kvh), axis=-1)
    x = jnp.einsum("bhqk,bhkd->bhqd", attn, kvh)
    return x.transpose(0, 2, 1, 3).reshape(B, nq, C)


# ----------------------------------------------------------------------------
# Main
# ----------------------------------------------------------------------------
if __name__ == "__main__":
    key = jax.random.PRNGKey(0)
    B = 2
    patchsize = 8
    nq = patchsize * patchsize      # 64 query tokens (one 8x8 patch)
    nkv = patchsize * patchsize     # 64 key/value tokens
    C = 32                          # hidden size
    d_model = 35                    # module default (only sets the scale)

    kq, kkv = jax.random.split(key)
    q = jax.random.normal(kq, (B, nq, C), jnp.float32)
    kv = jax.random.normal(kkv, (B, nkv, C), jnp.float32)

    # default single-head config (module defaults)
    out1 = jax.block_until_ready(
        multi_headed_attention2(q, kv, B, None, C, n_head=1, d_model=d_model))
    ref1 = jax.block_until_ready(_reference(q, kv, n_head=1, d_model=d_model))
    assert out1.shape == (B, nq, C)
    assert bool(jnp.allclose(out1, ref1, rtol=2e-3, atol=2e-3)), (
        "max|diff| = %g" % float(jnp.max(jnp.abs(out1 - ref1))))

    # multi-head path (exercises the head-major layout + batched dot_general)
    out2 = jax.block_until_ready(
        multi_headed_attention2(q, kv, B, None, C, n_head=2, d_model=d_model))
    ref2 = jax.block_until_ready(_reference(q, kv, n_head=2, d_model=d_model))
    assert out2.shape == (B, nq, C)
    assert bool(jnp.allclose(out2, ref2, rtol=2e-3, atol=2e-3)), (
        "max|diff| = %g" % float(jnp.max(jnp.abs(out2 - ref2))))

    print("KERNEL_OK")
</pallas_src>

<mosaic_0001>
module attributes {stable_mosaic.version = 11 : i64} {
  func.func @kernel(%arg0: memref<2x64x32xf32, #tpu.memory_space<vmem>>, %arg1: memref<2x64x32xf32, #tpu.memory_space<vmem>>, %arg2: memref<2x64x32xf32, #tpu.memory_space<vmem>>) attributes {dimension_semantics = [], scalar_prefetch = 0 : i64, scratch_operands = 0 : i64, tpu.core_type = #tpu.core_type<tc>} {
    %c0 = arith.constant 0 : index
    %c0_0 = arith.constant 0 : index
    %c0_1 = arith.constant 0 : index
    %0 = vector.load %arg0[%c0, %c0_0, %c0_1] : memref<2x64x32xf32, #tpu.memory_space<vmem>>, vector<2x64x32xf32>
    %cst = arith.constant 0.169030845 : f32
    %1 = vector.broadcast %cst : f32 to vector<2x64x32xf32>
    %2 = arith.mulf %0, %1 : vector<2x64x32xf32>
    %c0_2 = arith.constant 0 : index
    %c0_3 = arith.constant 0 : index
    %c0_4 = arith.constant 0 : index
    %3 = vector.load %arg1[%c0_2, %c0_3, %c0_4] : memref<2x64x32xf32, #tpu.memory_space<vmem>>, vector<2x64x32xf32>
    "tpu.trace_start"() <{level = 10 : i32, message = "bqd,bkd->bqk"}> : () -> ()
    %cst_5 = arith.constant dense<0.000000e+00> : vector<2x64x64xf32>
    %4 = tpu.matmul %2, %3, %cst_5 {dimension_numbers = #tpu.dot_dimension_numbers<[2], [2], [1], [1], [0, 0, 0, 1, 1, 1], [0], [0]>} : vector<2x64x32xf32>, vector<2x64x32xf32>, vector<2x64x64xf32> -> vector<2x64x64xf32>
    "tpu.trace_stop"() : () -> ()
    %cst_6 = arith.constant dense<0xFF800000> : vector<2x64xf32>
    %5 = vector.multi_reduction <maximumf>, %4, %cst_6 [2] : vector<2x64x64xf32> to vector<2x64xf32>
    %6 = vector.shape_cast %5 : vector<2x64xf32> to vector<2x64x1xf32>
    %7 = vector.broadcast %6 : vector<2x64x1xf32> to vector<2x64x64xf32>
    %8 = arith.subf %4, %7 : vector<2x64x64xf32>
    %9 = math.exp %8 : vector<2x64x64xf32>
    %cst_7 = arith.constant dense<0.000000e+00> : vector<2x64xf32>
    %10 = vector.multi_reduction <add>, %9, %cst_7 [2] : vector<2x64x64xf32> to vector<2x64xf32>
    %11 = vector.shape_cast %10 : vector<2x64xf32> to vector<2x64x1xf32>
    "tpu.trace_start"() <{level = 10 : i32, message = "bqk,bkd->bqd"}> : () -> ()
    %cst_8 = arith.constant dense<0.000000e+00> : vector<2x64x32xf32>
    %12 = tpu.matmul %9, %3, %cst_8 {dimension_numbers = #tpu.dot_dimension_numbers<[2], [1], [1], [2], [0, 0, 0, 1, 1, 2], [0], [0]>} : vector<2x64x64xf32>, vector<2x64x32xf32>, vector<2x64x32xf32> -> vector<2x64x32xf32>
    "tpu.trace_stop"() : () -> ()
    %13 = tpu.reciprocal %11 {approx = true} : vector<2x64x1xf32> -> vector<2x64x1xf32>
    %14 = vector.broadcast %13 : vector<2x64x1xf32> to vector<2x64x32xf32>
    %15 = arith.mulf %12, %14 : vector<2x64x32xf32>
    %c0_9 = arith.constant 0 : index
    %c0_10 = arith.constant 0 : index
    %c0_11 = arith.constant 0 : index
    %16 = vector.load %arg2[%c0_9, %c0_10, %c0_11] : memref<2x64x32xf32, #tpu.memory_space<vmem>>, vector<2x64x32xf32>
    tpu.vector_store %arg2[%c0_9, %c0_10, %c0_11], %15 {strides = array<i32>} : memref<2x64x32xf32, #tpu.memory_space<vmem>>, vector<2x64x32xf32>,
    return
  }
}

</mosaic_0001>

<bundles_post_ra>
// kernel: tpu_custom_call.1
= control target key start
LH: loop header
LB: loop body
LE: loop exit
PB: predicated region body
PF: predicated region fallthrough
CT: control target
= control target key end

     0   :  { %vm59_vm0 = vcmask 261120   ;;  %vm366_vm2 = vcmask 523264   ;;  %s1550_s1 = inlined_call_operand.vmem [shape: f32[2,64,32], index: 1, kind: input, shape index: {}]   ;;  %s1551_s0 = inlined_call_operand.vmem [shape: f32[2,64,32], index: 0, kind: input, shape index: {}]   ;;  %s1552_s2 = inlined_call_operand.vmem [shape: f32[2,64,32], index: 2, kind: output, shape index: {}]  }
   0x1   :  { %v43_v0 = vld [vmem:[%s1550_s1] sm:$0xff]  ;;  %v44_v1 = vld [vmem:[%s1550_s1 + $0x8] sm:$0xff]  ;;  %vm1212_vm1 = vmpackc.low %vm59_vm0, %vm59_vm0 }
   0x2   :  { %v1216_v3 = vpack.c.bf16 %v44_v1, %v43_v0  ;;  %v51_v4 = vld [vmem:[%s1550_s1 + $0x40] sm:$0xff]  ;;  %v52_v5 = vld [vmem:[%s1550_s1 + $0x48] sm:$0xff]  ;;  %v45_v6 = vld [vmem:[%s1550_s1 + $0x10] sm:$0xff] }
   0x3   :  { %v1227_v7 = vpack.c.bf16 %v52_v5, %v51_v4  ;;  %v46_v8 = vld [vmem:[%s1550_s1 + $0x18] sm:$0xff]  ;;  %v53_v9 = vld [vmem:[%s1550_s1 + $0x50] sm:$0xff]  ;;  %v11_v13 = vld [vmem:[%s1551_s0] sm:$0xff] }
   0x4   :  { %v54_v10 = vld [vmem:[%s1550_s1 + $0x58] sm:$0xff]  ;;  %1047 = vmatprep.subr.msk.bf16.mxu0 %vm1212_vm1, %v1216_v3  ;;  %v1241_v11 = vpack.c.bf16 %v46_v8, %v45_v6  ;;  %v47_v14 = vld [vmem:[%s1550_s1 + $0x20] sm:$0xff]  ;;  %v48_v15 = vld [vmem:[%s1550_s1 + $0x28] sm:$0xff]  ;;  %v27_v16 = vmul.f32 0.16903085, %v11_v13 }
   0x5   :  { %v1243_v12 = vpack.c.bf16 %v54_v10, %v53_v9  ;;  %1050 = vmatpush3.bf16.xpose.msk.msra.mxu0 %vm1212_vm1, %v1216_v3  ;;  %1071 = vmatprep.subr.msk.bf16.mxu1 %vm1212_vm1, %v1227_v7  ;;  %v19_v17 = vld [vmem:[%s1551_s0 + $0x40] sm:$0xff]  ;;  %v56_v19 = vld [vmem:[%s1550_s1 + $0x68] sm:$0xff]  ;;  %v1279_v21 = vpack.c.bf16 %v48_v15, %v47_v14  ;;  %v49_v23 = vld [vmem:[%s1550_s1 + $0x30] sm:$0xff] }
   0x6   :  { %1074 = vmatpush3.bf16.xpose.msk.msra.mxu1 %vm1212_vm1, %v1227_v7  ;;  %1053 = vmatprep.subr.msk.bf16.mxu0 %vm1212_vm1, %v1241_v11  ;;  %v55_v18 = vld [vmem:[%s1550_s1 + $0x60] sm:$0xff]  ;;  %v35_v20 = vmul.f32 0.16903085, %v19_v17  ;;  %v50_v24 = vld [vmem:[%s1550_s1 + $0x38] sm:$0xff]  ;;  %v57_v25 = vld [vmem:[%s1550_s1 + $0x70] sm:$0xff] }
   0x7   :  { %1077 = vmatprep.subr.msk.bf16.mxu1 %vm1212_vm1, %v1243_v12  ;;  %949 = vmatprep.mubr.msk.f32.mxu0 %vm59_vm0, %v27_v16  ;;  %v1282_v22 = vpack.c.bf16 %v56_v19, %v55_v18  ;;  %v58_v26 = vld [vmem:[%s1550_s1 + $0x78] sm:$0xff]  ;;  %v1308_v27 = vpack.c.bf16 %v50_v24, %v49_v23  ;;  %v12_v29 = vld [vmem:[%s1551_s0 + $0x8] sm:$0xff]  ;;  %v13_v31 = vld [vmem:[%s1551_s0 + $0x10] sm:$0xff] }
   0x8   :  { %977 = vmatprep.mubr.msk.f32.mxu1 %vm59_vm0, %v35_v20  ;;  %v1310_v28 = vpack.c.bf16 %v58_v26, %v57_v25  ;;  %v20_v30 = vld [vmem:[%s1551_s0 + $0x48] sm:$0xff]  ;;  %v21_v32 = vld [vmem:[%s1551_s0 + $0x50] sm:$0xff]  ;;  %v28_v33 = vmul.f32 0.16903085, %v12_v29  ;;  %v29_v35 = vmul.f32 0.16903085, %v13_v31 }
   0x9   :  { %v36_v34 = vmul.f32 0.16903085, %v20_v30  ;;  %v14_v36 = vld [vmem:[%s1551_s0 + $0x18] sm:$0xff]  ;;  %v37_v37 = vmul.f32 0.16903085, %v21_v32  ;;  %v15_v39 = vld [vmem:[%s1551_s0 + $0x20] sm:$0xff] }
   0xa   :  { %v22_v38 = vld [vmem:[%s1551_s0 + $0x58] sm:$0xff]  ;;  %v23_v40 = vld [vmem:[%s1551_s0 + $0x60] sm:$0xff]  ;;  %v30_v41 = vmul.f32 0.16903085, %v14_v36  ;;  %v31_v43 = vmul.f32 0.16903085, %v15_v39 }
   0xb   :  { %v38_v42 = vmul.f32 0.16903085, %v22_v38  ;;  %v16_v44 = vld [vmem:[%s1551_s0 + $0x28] sm:$0xff]  ;;  %v39_v45 = vmul.f32 0.16903085, %v23_v40  ;;  %v17_v47 = vld [vmem:[%s1551_s0 + $0x30] sm:$0xff] }
   0xc   :  { %v24_v46 = vld [vmem:[%s1551_s0 + $0x68] sm:$0xff]  ;;  %v25_v48 = vld [vmem:[%s1551_s0 + $0x70] sm:$0xff]  ;;  %v32_v49 = vmul.f32 0.16903085, %v16_v44  ;;  %v33_v51 = vmul.f32 0.16903085, %v17_v47 }
   0xd   :  { %1056 = vmatpush3.bf16.xpose.msk.msra.mxu0 %vm1212_vm1, %v1241_v11  ;;  %v40_v50 = vmul.f32 0.16903085, %v24_v46  ;;  %v18_v52 = vld [vmem:[%s1551_s0 + $0x38] sm:$0xff]  ;;  %v41_v53 = vmul.f32 0.16903085, %v25_v48 }
   0xe   :  { %1080 = vmatpush3.bf16.xpose.msk.msra.mxu1 %vm1212_vm1, %v1243_v12  ;;  %1059 = vmatprep.subr.msk.bf16.mxu0 %vm1212_vm1, %v1279_v21  ;;  %v26_v54 = vld [vmem:[%s1551_s0 + $0x78] sm:$0xff]  ;;  %v34_v55 = vmul.f32 0.16903085, %v18_v52 }
   0xf   :  { %1083 = vmatprep.subr.msk.bf16.mxu1 %vm1212_vm1, %v1282_v22  ;;  %v42_v56 = vmul.f32 0.16903085, %v26_v54 }
  0x15   :  { %1062 = vmatpush3.bf16.xpose.msk.msra.mxu0 %vm1212_vm1, %v1279_v21 }
  0x16   :  { %1086 = vmatpush3.bf16.xpose.msk.msra.mxu1 %vm1212_vm1, %v1282_v22  ;;  %1065 = vmatprep.subr.msk.bf16.mxu0 %vm1212_vm1, %v1308_v27 }
  0x17   :  { %1089 = vmatprep.subr.msk.bf16.mxu1 %vm1212_vm1, %v1310_v28 }
  0x1d   :  { %1068 = vmatpush3.bf16.xpose.msk.msra.mxu0 %vm1212_vm1, %v1308_v27 }
  0x1e   :  { %1092 = vmatpush3.bf16.xpose.msk.msra.mxu1 %vm1212_vm1, %v1310_v28  ;;  %1094 = vmatprep.subr.bf16.mxu0 %v1216_v3 }
  0x1f   :  { %1110 = vmatprep.subr.bf16.mxu1 %v1227_v7 }
  0x24   :  { %950 = vmatmul.mubr.msk.f32.vlgmr.msra.gmra.mrb[0].mxu0 %vm59_vm0, %v28_v33 }
  0x25   :  { %978 = vmatmul.mubr.msk.f32.vlgmr.msra.gmra.mrb[0].mxu1 %vm59_vm0, %v36_v34  ;;  %952 = vmatprep.mubr.msk.f32.mxu0 %vm59_vm0, %v29_v35 }
  0x26   :  { %980 = vmatprep.mubr.msk.f32.mxu1 %vm59_vm0, %v37_v37  ;;  %1096 = vmatpush3.bf16.msra.mxu0 %v1216_v3 }
  0x27   :  { %1098 = vmatprep.subr.bf16.mxu0 %v1241_v11  ;;  %1112 = vmatpush3.bf16.msra.mxu1 %v1227_v7 }
  0x28   :  { %953 = vmatmul.mubr.msk.f32.gmra.mrb[2].mxu0 %vm59_vm0, %v30_v41  ;;  %1114 = vmatprep.subr.bf16.mxu1 %v1243_v12 }
  0x29   :  { %981 = vmatmul.mubr.msk.f32.gmra.mrb[2].mxu1 %vm59_vm0, %v38_v42  ;;  %955 = vmatprep.mubr.msk.f32.mxu0 %vm59_vm0, %v31_v43 }
  0x2a   :  { %983 = vmatprep.mubr.msk.f32.mxu1 %vm59_vm0, %v39_v45  ;;  %1100 = vmatpush3.bf16.msra.mxu0 %v1241_v11 }
  0x2b   :  { %1102 = vmatprep.subr.bf16.mxu0 %v1279_v21  ;;  %1116 = vmatpush3.bf16.msra.mxu1 %v1243_v12 }
  0x2c   :  { %956 = vmatmul.mubr.msk.f32.gmra.mrb[4].mxu0 %vm59_vm0, %v32_v49  ;;  %1118 = vmatprep.subr.bf16.mxu1 %v1282_v22 }
  0x2d   :  { %984 = vmatmul.mubr.msk.f32.gmra.mrb[4].mxu1 %vm59_vm0, %v40_v50  ;;  %958 = vmatprep.mubr.msk.f32.mxu0 %vm59_vm0, %v33_v51 }
  0x2e   :  { %986 = vmatprep.mubr.msk.f32.mxu1 %vm59_vm0, %v41_v53  ;;  %1104 = vmatpush3.bf16.msra.mxu0 %v1279_v21 }
  0x2f   :  { %1106 = vmatprep.subr.bf16.mxu0 %v1308_v27  ;;  %1120 = vmatpush3.bf16.msra.mxu1 %v1282_v22 }
  0x30   :  { %959 = vmatmul.mubr.msk.f32.gmra.mrb[6].mxu0 %vm59_vm0, %v34_v55  ;;  %1122 = vmatprep.subr.bf16.mxu1 %v1310_v28 }
  0x31   :  { %987 = vmatmul.mubr.msk.f32.gmra.mrb[6].mxu1 %vm59_vm0, %v42_v56 }
  0x32   :  { %1108 = vmatpush3.bf16.msra.mxu0 %v1308_v27 }
  0x33   :  { %1124 = vmatpush3.bf16.msra.mxu1 %v1310_v28 }
  0xf7   :  { %v951_v57 = vpop.f32.mrb[0].mxu0 }
  0xf8   :  { %v174_v58 = vpop.f32.mrb[1].mxu0  ;;  %v370_v59 = vsel %vm366_vm2, %v951_v57, -inf  ;;  %v979_v60 = vpop.f32.mrb[0].mxu1 }
  0xf9   :  { %371 = vmax.xlane.f32.xlu1 %v370_v59  ;;  %v367_v61 = vsel %vm366_vm2, %v174_v58, -inf  ;;  %v327_v62 = vpop.f32.mrb[1].mxu1  ;;  %v394_v63 = vsel %vm366_vm2, %v979_v60, -inf }
  0xfa   :  { %368 = vmax.xlane.f32.xlu0 %v367_v61  ;;  %v391_v0 = vsel %vm366_vm2, %v327_v62, -inf }
  0xfb   :  { %v954_v1 = vpop.f32.mrb[2].mxu0 }
  0xfc   :  { %v982_v2 = vpop.f32.mrb[2].mxu1  ;;  %v1406_v3 = vpop.f32.mrb[3].mxu0  ;;  %v376_v6 = vsel %vm366_vm2, %v954_v1, -inf }
  0xfd   :  { %395 = vmax.xlane.f32.xlu1 %v394_v63  ;;  %v337_v4 = vpop.f32.mrb[3].mxu1  ;;  %v400_v5 = vsel %vm366_vm2, %v982_v2, -inf  ;;  %v373_v15 = vsel %vm366_vm2, %v1406_v3, -inf }
  0xfe   :  { %392 = vmax.xlane.f32.xlu0 %v391_v0  ;;  %v397_v12 = vsel %vm366_vm2, %v337_v4, -inf }
  0xff   :  { %v1410_v7 = vpop.f32.mrb[4].mxu0 }
 0x100   :  { %v1412_v8 = vpop.f32.mrb[4].mxu1  ;;  %v1414_v9 = vpop.f32.mrb[5].mxu0  ;;  %v382_v18 = vsel %vm366_vm2, %v1410_v7, -inf }
 0x101   :  { %401 = vmax.xlane.f32.xlu1 %v400_v5  ;;  %v1416_v10 = vpop.f32.mrb[5].mxu1  ;;  %v406_v17 = vsel %vm366_vm2, %v1412_v8, -inf  ;;  %v379_v20 = vsel %vm366_vm2, %v1414_v9, -inf }
 0x102   :  { %377 = vmax.xlane.f32.xlu0 %v376_v6  ;;  %v403_v19 = vsel %vm366_vm2, %v1416_v10, -inf }
 0x103   :  { %v1418_v11 = vpop.f32.mrb[6].mxu0 }
 0x104   :  { %v1421_v13 = vpop.f32.mrb[6].mxu1  ;;  %v1423_v14 = vpop.f32.mrb[7].mxu0  ;;  %v388_v24 = vsel %vm366_vm2, %v1418_v11, -inf }
 0x105   :  { %398 = vmax.xlane.f32.xlu1 %v397_v12  ;;  %v1427_v16 = vpop.f32.mrb[7].mxu1  ;;  %v385_v22 = vsel %vm366_vm2, %v1423_v14, -inf  ;;  %v412_v23 = vsel %vm366_vm2, %v1421_v13, -inf }
 0x106   :  { %374 = vmax.xlane.f32.xlu0 %v373_v15  ;;  %v409_v21 = vsel %vm366_vm2, %v1427_v16, -inf }
 0x109   :  { %407 = vmax.xlane.f32.xlu1 %v406_v17 }
 0x10a   :  { %383 = vmax.xlane.f32.xlu0 %v382_v18 }
 0x10d   :  { %404 = vmax.xlane.f32.xlu1 %v403_v19 }
 0x10e   :  { %380 = vmax.xlane.f32.xlu0 %v379_v20 }
 0x111   :  { %410 = vmax.xlane.f32.xlu1 %v409_v21 }
 0x112   :  { %386 = vmax.xlane.f32.xlu0 %v385_v22 }
 0x115   :  { %413 = vmax.xlane.f32.xlu1 %v412_v23 }
 0x116   :  { %389 = vmax.xlane.f32.xlu0 %v388_v24 }
 0x186   :  { %v372_v25 = vpop.xlane.xlu1 %371 }
 0x187   :  { %v416_v26 = vsub.f32 %v951_v57, %v372_v25  ;;  %v369_v27 = vpop.xlane.xlu0 %368 }
 0x188   :  { %v415_v28 = vsub.f32 %v174_v58, %v369_v27 }
 0x189   :  { %v433_v29 = vmul.f32 1.442695, %v416_v26 }
 0x18a   :  { %v431_v30 = vmul.f32 1.442695, %v415_v28  ;;  %v396_v31 = vpop.xlane.xlu1 %395 }
 0x18b   :  { %1125 = vpow2.f32 %v433_v29  ;;  %v424_v32 = vsub.f32 %v979_v60, %v396_v31  ;;  %v393_v33 = vpop.xlane.xlu0 %392 }
 0x18c   :  { %1127 = vpow2.f32 %v431_v30  ;;  %v423_v34 = vsub.f32 %v327_v62, %v393_v33 }
 0x18d   :  { %v449_v35 = vmul.f32 1.442695, %v424_v32 }
 0x18e   :  { %v447_v36 = vmul.f32 1.442695, %v423_v34  ;;  %v402_v37 = vpop.xlane.xlu1 %401 }
 0x18f   :  { %1129 = vpow2.f32 %v449_v35  ;;  %v426_v38 = vsub.f32 %v982_v2, %v402_v37  ;;  %v378_v39 = vpop.xlane.xlu0 %377 }
 0x190   :  { %1131 = vpow2.f32 %v447_v36  ;;  %v418_v40 = vsub.f32 %v954_v1, %v378_v39 }
 0x191   :  { %v453_v41 = vmul.f32 1.442695, %v426_v38 }
 0x192   :  { %v437_v42 = vmul.f32 1.442695, %v418_v40  ;;  %v399_v43 = vpop.xlane.xlu1 %398 }
 0x193   :  { %v425_v44 = vsub.f32 %v337_v4, %v399_v43  ;;  %v375_v45 = vpop.xlane.xlu0 %374 }
 0x194   :  { %1133 = vpow2.f32 %v437_v42  ;;  %v417_v46 = vsub.f32 %v1406_v3, %v375_v45 }
 0x195   :  { %v1126_v47 = vpop.eup %1125  ;;  %v451_v48 = vmul.f32 1.442695, %v425_v44  ;;  %1135 = vpow2.f32 %v453_v41 }
 0x196   :  { %v1128_v49 = vpop.eup %1127  ;;  %v435_v50 = vmul.f32 1.442695, %v417_v46  ;;  %v408_v51 = vpop.xlane.xlu1 %407  ;;  %v466_v52 = vsel %vm366_vm2, %v1126_v47, 0.0 }
 0x197   :  { %1137 = vpow2.f32 %v451_v48  ;;  %v428_v53 = vsub.f32 %v1412_v8, %v408_v51  ;;  %467 = vadd.xlane.f32.xlu1 %v466_v52  ;;  %1005 = vmatprep.mubr.msk.f32.mxu0 %vm366_vm2, %v1128_v49  ;;  %v384_v54 = vpop.xlane.xlu0 %383  ;;  %v463_v55 = vsel %vm366_vm2, %v1128_v49, 0.0 }
 0x198   :  { %1139 = vpow2.f32 %v435_v50  ;;  %v420_v56 = vsub.f32 %v1410_v7, %v384_v54  ;;  %1006 = vmatmul.mubr.msk.f32.vlgmr.msra.gmra.mrb[8].mxu0 %vm366_vm2, %v1126_v47  ;;  %464 = vadd.xlane.f32.xlu0 %v463_v55 }
 0x199   :  { %v1130_v57 = vpop.eup %1129  ;;  %v457_v59 = vmul.f32 1.442695, %v428_v53 }
 0x19a   :  { %v1132_v58 = vpop.eup %1131  ;;  %v441_v60 = vmul.f32 1.442695, %v420_v56  ;;  %v405_v61 = vpop.xlane.xlu1 %404  ;;  %v490_v62 = vsel %vm366_vm2, %v1130_v57, 0.0 }
 0x19b   :  { %v427_v63 = vsub.f32 %v1416_v10, %v405_v61  ;;  %491 = vadd.xlane.f32.xlu1 %v490_v62  ;;  %1033 = vmatprep.mubr.msk.f32.mxu1 %vm366_vm2, %v1132_v58  ;;  %v381_v0 = vpop.xlane.xlu0 %380  ;;  %v487_v1 = vsel %vm366_vm2, %v1132_v58, 0.0 }
 0x19c   :  { %1141 = vpow2.f32 %v441_v60  ;;  %v419_v2 = vsub.f32 %v1414_v9, %v381_v0  ;;  %1034 = vmatmul.mubr.msk.f32.vlgmr.msra.gmra.mrb[8].mxu1 %vm366_vm2, %v1130_v57  ;;  %488 = vadd.xlane.f32.xlu0 %v487_v1 }
 0x19d   :  { %v455_v3 = vmul.f32 1.442695, %v427_v63  ;;  %1143 = vpow2.f32 %v457_v59 }
 0x19e   :  { %v1134_v4 = vpop.eup %1133  ;;  %v439_v5 = vmul.f32 1.442695, %v419_v2  ;;  %v411_v6 = vpop.xlane.xlu1 %410 }
 0x19f   :  { %1145 = vpow2.f32 %v455_v3  ;;  %v429_v7 = vsub.f32 %v1427_v16, %v411_v6  ;;  %v387_v8 = vpop.xlane.xlu0 %386  ;;  %v472_v10 = vsel %vm366_vm2, %v1134_v4, 0.0  ;;  %v1136_v12 = vpop.eup %1135 }
 0x1a0   :  { %1147 = vpow2.f32 %v439_v5  ;;  %v421_v15 = vsub.f32 %v1423_v14, %v387_v8  ;;  %473 = vadd.xlane.f32.xlu1 %v472_v10  ;;  %v496_v22 = vsel %vm366_vm2, %v1136_v12, 0.0 }
 0x1a1   :  { %v1138_v9 = vpop.eup %1137  ;;  %v459_v17 = vmul.f32 1.442695, %v429_v7 }
 0x1a2   :  { %v1140_v18 = vpop.eup %1139  ;;  %v443_v19 = vmul.f32 1.442695, %v421_v15  ;;  %v414_v20 = vpop.xlane.xlu1 %413  ;;  %1036 = vmatprep.mubr.msk.f32.mxu1 %vm366_vm2, %v1138_v9  ;;  %v493_v28 = vsel %vm366_vm2, %v1138_v9, 0.0 }
 0x1a3   :  { %1149 = vpow2.f32 %v459_v17  ;;  %v430_v21 = vsub.f32 %v1421_v13, %v414_v20  ;;  %1008 = vmatprep.mubr.msk.f32.mxu0 %vm366_vm2, %v1140_v18  ;;  %1037 = vmatmul.mubr.msk.f32.gmra.mrb[10].mxu1 %vm366_vm2, %v1136_v12  ;;  %v390_v16 = vpop.xlane.xlu0 %389  ;;  %v469_v14 = vsel %vm366_vm2, %v1140_v18, 0.0 }
 0x1a4   :  { %1151 = vpow2.f32 %v443_v19  ;;  %v422_v23 = vsub.f32 %v1418_v11, %v390_v16  ;;  %497 = vadd.xlane.f32.xlu1 %v496_v22  ;;  %1009 = vmatmul.mubr.msk.f32.gmra.mrb[10].mxu0 %vm366_vm2, %v1134_v4 }
 0x1a5   :  { %v461_v24 = vmul.f32 1.442695, %v430_v21  ;;  %470 = vadd.xlane.f32.xlu0 %v469_v14 }
 0x1a6   :  { %v1142_v25 = vpop.eup %1141  ;;  %v445_v26 = vmul.f32 1.442695, %v422_v23 }
 0x1a7   :  { %1153 = vpow2.f32 %v461_v24  ;;  %v478_v13 = vsel %vm366_vm2, %v1142_v25, 0.0  ;;  %v1144_v27 = vpop.eup %1143 }
 0x1a8   :  { %1155 = vpow2.f32 %v445_v26  ;;  %479 = vadd.xlane.f32.xlu1 %v478_v13  ;;  %v502_v11 = vsel %vm366_vm2, %v1144_v27, 0.0 }
 0x1a9   :  { %v1146_v29 = vpop.eup %1145  ;;  %494 = vadd.xlane.f32.xlu0 %v493_v28 }
 0x1aa   :  { %v1148_v30 = vpop.eup %1147  ;;  %1039 = vmatprep.mubr.msk.f32.mxu1 %vm366_vm2, %v1146_v29  ;;  %v499_v34 = vsel %vm366_vm2, %v1146_v29, 0.0 }
 0x1ab   :  { %1011 = vmatprep.mubr.msk.f32.mxu0 %vm366_vm2, %v1148_v30  ;;  %1040 = vmatmul.mubr.msk.f32.gmra.mrb[12].mxu1 %vm366_vm2, %v1144_v27  ;;  %v475_v31 = vsel %vm366_vm2, %v1148_v30, 0.0 }
 0x1ac   :  { %503 = vadd.xlane.f32.xlu1 %v502_v11  ;;  %1012 = vmatmul.mubr.msk.f32.gmra.mrb[12].mxu0 %vm366_vm2, %v1142_v25 }
 0x1ad   :  { %v1150_v32 = vpop.eup %1149  ;;  %476 = vadd.xlane.f32.xlu0 %v475_v31 }
 0x1ae   :  { %v1152_v33 = vpop.eup %1151  ;;  %1042 = vmatprep.mubr.msk.f32.mxu1 %vm366_vm2, %v1150_v32  ;;  %v505_v40 = vsel %vm366_vm2, %v1150_v32, 0.0 }
 0x1af   :  { %1014 = vmatprep.mubr.msk.f32.mxu0 %vm366_vm2, %v1152_v33  ;;  %v481_v38 = vsel %vm366_vm2, %v1152_v33, 0.0 }
 0x1b1   :  { %v1154_v35 = vpop.eup %1153  ;;  %500 = vadd.xlane.f32.xlu0 %v499_v34 }
 0x1b2   :  { %v1156_v36 = vpop.eup %1155  ;;  %1043 = vmatmul.mubr.msk.f32.gmra.mrb[14].mxu1 %vm366_vm2, %v1154_v35  ;;  %v508_v39 = vsel %vm366_vm2, %v1154_v35, 0.0 }
 0x1b3   :  { %1015 = vmatmul.mubr.msk.f32.gmra.mrb[14].mxu0 %vm366_vm2, %v1156_v36  ;;  %v484_v37 = vsel %vm366_vm2, %v1156_v36, 0.0 }
 0x1b4   :  { %485 = vadd.xlane.f32.xlu1 %v484_v37 }
 0x1b5   :  { %482 = vadd.xlane.f32.xlu0 %v481_v38 }
 0x1b8   :  { %509 = vadd.xlane.f32.xlu1 %v508_v39 }
 0x1b9   :  { %506 = vadd.xlane.f32.xlu0 %v505_v40 }
 0x224   :  { %v468_v41 = vpop.xlane.xlu1 %467 }
 0x225   :  { %v465_v42 = vpop.xlane.xlu0 %464  ;;  %1157 = vrcp.f32 %v468_v41 }
 0x226   :  { %1159 = vrcp.f32 %v465_v42 }
 0x228   :  { %v492_v43 = vpop.xlane.xlu1 %491 }
 0x229   :  { %v489_v44 = vpop.xlane.xlu0 %488  ;;  %1161 = vrcp.f32 %v492_v43 }
 0x22a   :  { %1163 = vrcp.f32 %v489_v44 }
 0x22d   :  { %v474_v46 = vpop.xlane.xlu1 %473 }
 0x22e   :  { %1165 = vrcp.f32 %v474_v46 }
 0x22f   :  { %v1158_v51 = vpop.eup %1157 }
 0x230   :  { %v1160_v53 = vpop.eup %1159 }
 0x231   :  { %v498_v48 = vpop.xlane.xlu1 %497 }
 0x232   :  { %v471_v45 = vpop.xlane.xlu0 %470  ;;  %1167 = vrcp.f32 %v498_v48 }
 0x233   :  { %v1162_v59 = vpop.eup %1161 }
 0x234   :  { %v1164_v61 = vpop.eup %1163 }
 0x235   :  { %v480_v50 = vpop.xlane.xlu1 %479 }
 0x236   :  { %v495_v47 = vpop.xlane.xlu0 %494 }
 0x237   :  { %1169 = vrcp.f32 %v495_v47 }
 0x238   :  { %1171 = vrcp.f32 %v471_v45  ;;  %v1166_v3 = vpop.eup %1165 }
 0x239   :  { %v504_v58 = vpop.xlane.xlu1 %503  ;;  %1173 = vrcp.f32 %v480_v50 }
 0x23a   :  { %v477_v49 = vpop.xlane.xlu0 %476  ;;  %1175 = vrcp.f32 %v504_v58 }
 0x23c   :  { %v1168_v4 = vpop.eup %1167 }
 0x23e   :  { %v501_v56 = vpop.xlane.xlu0 %500 }
 0x23f   :  { %1177 = vrcp.f32 %v501_v56 }
 0x240   :  { %1179 = vrcp.f32 %v477_v49 }
 0x241   :  { %v486_v1 = vpop.xlane.xlu1 %485  ;;  %v1170_v6 = vpop.eup %1169 }
 0x242   :  { %v483_v2 = vpop.xlane.xlu0 %482  ;;  %v1172_v12 = vpop.eup %1171  ;;  %1181 = vrcp.f32 %v486_v1 }
 0x243   :  { %v1174_v21 = vpop.eup %1173 }
 0x244   :  { %v1176_v16 = vpop.eup %1175 }
 0x245   :  { %v510_v15 = vpop.xlane.xlu1 %509 }
 0x246   :  { %v507_v19 = vpop.xlane.xlu0 %506  ;;  %1183 = vrcp.f32 %v510_v15 }
 0x247   :  { %1185 = vrcp.f32 %v507_v19 }
 0x248   :  { %1187 = vrcp.f32 %v483_v2 }
 0x249   :  { %v1178_v14 = vpop.eup %1177 }
 0x24a   :  { %v1180_v26 = vpop.eup %1179 }
 0x24c   :  { %v1182_v30 = vpop.eup %1181 }
 0x250   :  { %v1184_v11 = vpop.eup %1183 }
 0x251   :  { %v1186_v32 = vpop.eup %1185 }
 0x252   :  { %v1188_v36 = vpop.eup %1187 }
 0x26b   :  { %v1007_v52 = vpop.f32.mrb[8].mxu0 }
 0x26c   :  { %v786_v54 = vmul.f32 %v1158_v51, %v1007_v52  ;;  %v601_v55 = vpop.f32.mrb[9].mxu0 }
 0x26d   :  { %v785_v57 = vmul.f32 %v1160_v53, %v601_v55 }
 0x26e   :  { %802 = vst.msk [vmem:[%s1552_s2 + $0x8] sm:$0xff] %vm59_vm0, %v786_v54 }
 0x26f   :  { %801 = vst.msk [vmem:[%s1552_s2] sm:$0xff] %vm59_vm0, %v785_v57  ;;  %v1035_v60 = vpop.f32.mrb[8].mxu1 }
 0x270   :  { %v794_v62 = vmul.f32 %v1162_v59, %v1035_v60  ;;  %v730_v63 = vpop.f32.mrb[9].mxu1 }
 0x271   :  { %v793_v0 = vmul.f32 %v1164_v61, %v730_v63 }
 0x272   :  { %810 = vst.msk [vmem:[%s1552_s2 + $0x48] sm:$0xff] %vm59_vm0, %v794_v62 }
 0x273   :  { %809 = vst.msk [vmem:[%s1552_s2 + $0x40] sm:$0xff] %vm59_vm0, %v793_v0 }
 0x276   :  { %v1038_v5 = vpop.f32.mrb[10].mxu1 }
 0x277   :  { %v796_v7 = vmul.f32 %v1168_v4, %v1038_v5  ;;  %v1010_v8 = vpop.f32.mrb[10].mxu0  ;;  %v740_v10 = vpop.f32.mrb[11].mxu1 }
 0x278   :  { %v788_v9 = vmul.f32 %v1166_v3, %v1010_v8  ;;  %v795_v17 = vmul.f32 %v1170_v6, %v740_v10  ;;  %v611_v18 = vpop.f32.mrb[11].mxu0 }
 0x279   :  { %812 = vst.msk [vmem:[%s1552_s2 + $0x58] sm:$0xff] %vm59_vm0, %v796_v7  ;;  %v787_v20 = vmul.f32 %v1172_v12, %v611_v18 }
 0x27a   :  { %804 = vst.msk [vmem:[%s1552_s2 + $0x18] sm:$0xff] %vm59_vm0, %v788_v9  ;;  %811 = vst.msk [vmem:[%s1552_s2 + $0x50] sm:$0xff] %vm59_vm0, %v795_v17 }
 0x27b   :  { %803 = vst.msk [vmem:[%s1552_s2 + $0x10] sm:$0xff] %vm59_vm0, %v787_v20 }
 0x27e   :  { %v1041_v22 = vpop.f32.mrb[12].mxu1 }
 0x27f   :  { %v798_v23 = vmul.f32 %v1176_v16, %v1041_v22  ;;  %v1013_v24 = vpop.f32.mrb[12].mxu0  ;;  %v750_v25 = vpop.f32.mrb[13].mxu1 }
 0x280   :  { %v790_v13 = vmul.f32 %v1174_v21, %v1013_v24  ;;  %v797_v27 = vmul.f32 %v1178_v14, %v750_v25  ;;  %v621_v28 = vpop.f32.mrb[13].mxu0 }
 0x281   :  { %814 = vst.msk [vmem:[%s1552_s2 + $0x68] sm:$0xff] %vm59_vm0, %v798_v23  ;;  %v789_v29 = vmul.f32 %v1180_v26, %v621_v28 }
 0x282   :  { %806 = vst.msk [vmem:[%s1552_s2 + $0x28] sm:$0xff] %vm59_vm0, %v790_v13  ;;  %813 = vst.msk [vmem:[%s1552_s2 + $0x60] sm:$0xff] %vm59_vm0, %v797_v27 }
 0x283   :  { %805 = vst.msk [vmem:[%s1552_s2 + $0x20] sm:$0xff] %vm59_vm0, %v789_v29 }
 0x285   :  { %v1044_v31 = vpop.f32.mrb[14].mxu1 }
 0x286   :  { %v800_v33 = vmul.f32 %v1184_v11, %v1044_v31  ;;  %v1016_v34 = vpop.f32.mrb[14].mxu0  ;;  %v760_v35 = vpop.f32.mrb[15].mxu1 }
 0x287   :  { %v792_v37 = vmul.f32 %v1182_v30, %v1016_v34  ;;  %v799_v38 = vmul.f32 %v1186_v32, %v760_v35  ;;  %v631_v39 = vpop.f32.mrb[15].mxu0 }
 0x288   :  { %816 = vst.msk [vmem:[%s1552_s2 + $0x78] sm:$0xff] %vm59_vm0, %v800_v33  ;;  %v791_v40 = vmul.f32 %v1188_v36, %v631_v39 }
 0x289   :  { %808 = vst.msk [vmem:[%s1552_s2 + $0x38] sm:$0xff] %vm59_vm0, %v792_v37  ;;  %815 = vst.msk [vmem:[%s1552_s2 + $0x70] sm:$0xff] %vm59_vm0, %v799_v38 }
 0x28a   :  { %807 = vst.msk [vmem:[%s1552_s2 + $0x30] sm:$0xff] %vm59_vm0, %v791_v40 }

</bundles_post_ra>
